<compile_context>
chip_gen: v7x
topology: tpu7x:2x2x1
jax: 0.10.0
libtpu: 0.0.40
codegen_flags: <defaults>
</compile_context>

<pallas_src>
import functools

import jax
import jax.numpy as jnp
from jax import lax
from jax.experimental import pallas as pl
from jax.experimental.pallas import tpu as pltpu


_VMEM_LIMIT = 48 * 1024 * 1024


# --------------------------------------------------------------------------
# Path A: fused kernel, whole (C, M) slab(s) per grid step.
# --------------------------------------------------------------------------
def _gln_fused_kernel(x_ref, w_ref, b_ref, o_ref, *, eps):
    # x_ref block: (nb, C, M); w_ref/b_ref: (C, 1)
    x = x_ref[...].astype(jnp.float32)

    # Two-pass statistics per batch row (numerically robust).
    mean = jnp.mean(x, axis=2, keepdims=True)        # (nb, C, 1)  lane reduce (XLU)
    mean = jnp.mean(mean, axis=1, keepdims=True)     # (nb, 1, 1)  sublane reduce
    cen = x - mean
    var = jnp.mean(cen * cen, axis=2, keepdims=True)
    var = jnp.mean(var, axis=1, keepdims=True)       # (nb, 1, 1)
    inv_std = lax.rsqrt(var + eps)                   # EUP

    w = w_ref[...].astype(jnp.float32)[None]         # (1, C, 1)
    b = b_ref[...].astype(jnp.float32)[None]
    scale = w * inv_std                              # (nb, C, 1)
    shift = b - scale * mean                         # (nb, C, 1)

    o_ref[...] = (x * scale + shift).astype(o_ref.dtype)


# --------------------------------------------------------------------------
# Path B, pass 1: tiled stats -> per-batch (C, 1) scale/shift.
# --------------------------------------------------------------------------
def _gln_stats_kernel(x_ref, w_ref, b_ref, scale_ref, shift_ref,
                      acc_sum, acc_sq, *, eps, n_elems, m_total, tile_m,
                      needs_mask):
    t = pl.program_id(1)

    @pl.when(t == 0)
    def _():
        acc_sum[...] = jnp.zeros_like(acc_sum)
        acc_sq[...] = jnp.zeros_like(acc_sq)

    x = x_ref[...].astype(jnp.float32)               # (1, C, tile_m)
    if needs_mask:
        # Ragged last tile: zero out-of-range lanes (zeros do not perturb
        # sum / sumsq; we divide by the true element count).
        valid = m_total - t * tile_m
        col = lax.broadcasted_iota(jnp.int32, x.shape, 2)
        x = jnp.where(col < valid, x, 0.0)

    acc_sum[...] += jnp.sum(x, axis=-1, keepdims=True)    # (1, C, 1)
    acc_sq[...] += jnp.sum(x * x, axis=-1, keepdims=True)

    @pl.when(t == pl.num_programs(1) - 1)
    def _():
        inv_n = 1.0 / n_elems
        s1 = jnp.sum(acc_sum[...], axis=1, keepdims=True)  # (1, 1, 1)
        s2 = jnp.sum(acc_sq[...], axis=1, keepdims=True)
        mean = s1 * inv_n
        # Single-sweep var = E[x^2] - mean^2; clamp tiny negative cancellation.
        var = jnp.maximum(s2 * inv_n - mean * mean, 0.0)
        inv_std = lax.rsqrt(var + eps)
        w = w_ref[...].astype(jnp.float32)[None]            # (1, C, 1)
        b = b_ref[...].astype(jnp.float32)[None]
        scale = w * inv_std
        shift = b - scale * mean
        scale_ref[...] = scale
        shift_ref[...] = shift


# --------------------------------------------------------------------------
# Path B, pass 2: apply per-batch scale/shift tile-wise.
# --------------------------------------------------------------------------
def _gln_apply_kernel(x_ref, scale_ref, shift_ref, o_ref):
    x = x_ref[...].astype(jnp.float32)               # (1, C, tile_m)
    scale = scale_ref[...]                           # (1, C, 1) f32
    shift = shift_ref[...]
    o_ref[...] = (x * scale + shift).astype(o_ref.dtype)


# --------------------------------------------------------------------------
# Tiling heuristics.
# --------------------------------------------------------------------------
def _choose_batch_block(n, slab_bytes, target_bytes=2 * 1024 * 1024):
    """Largest divisor of n whose block stays under target and leaves >=2 steps."""
    cap = max(1, target_bytes // max(slab_bytes, 1))
    if n >= 2:
        cap = min(cap, max(1, n // 2))   # keep >=2 grid steps for megacore
    cap = min(cap, n)
    for d in range(int(cap), 0, -1):
        if n % d == 0:
            return d
    return 1


def _choose_tile_m(c, m, budget_bytes=2 * 1024 * 1024):
    """Lane tile (multiple of 128) keeping each (C, tile_m) f32 block ~budget.

    Prefers a tile that divides M exactly (no ragged last tile -> no masking,
    no partial stores).  Falls back to the largest in-budget tile otherwise.
    """
    if m <= 128:
        return m
    max_t = (budget_bytes // (c * 4)) // 128 * 128
    max_t = max(128, min(max_t, (m // 128) * 128))
    # Prefer a divisor of m among multiples of 128 up to max_t.
    best_div = 0
    t = 128
    while t <= max_t:
        if m % t == 0:
            best_div = t
        t += 128
    return best_div if best_div else max_t


# --------------------------------------------------------------------------
# Public wrapper.
# --------------------------------------------------------------------------
def global_layer_norm(x, weight=None, bias=None, eps=1e-8, *,
                      max_slab_bytes=4 * 1024 * 1024, force_tiled=False):
    """Pallas GlobalLayerNorm.  x: [N, C, K, S] or [N, C, L]."""
    x = jnp.asarray(x)
    orig_shape = x.shape
    if x.ndim == 3:
        n, c, m = x.shape
        x3 = x
    elif x.ndim == 4:
        n, c, k, s = x.shape
        m = k * s
        x3 = x.reshape(n, c, m)   # collapses contiguous trailing dims (free)
    else:
        raise ValueError("expected 3-D or 4-D input")

    if weight is None:
        w2 = jnp.ones((c, 1), jnp.float32)
    else:
        w2 = jnp.asarray(weight, jnp.float32).reshape(c, 1)
    if bias is None:
        b2 = jnp.zeros((c, 1), jnp.float32)
    else:
        b2 = jnp.asarray(bias, jnp.float32).reshape(c, 1)

    slab_bytes = c * m * x3.dtype.itemsize
    # Tiled two-pass path for slabs that stress VMEM, or when N == 1 (so the
    # lane-tile axis still feeds both v7x TensorCores).
    use_tiled = (force_tiled
                 or slab_bytes > max_slab_bytes
                 or (n == 1 and slab_bytes > 512 * 1024))

    if not use_tiled:
        nb = _choose_batch_block(n, slab_bytes)
        out3 = pl.pallas_call(
            functools.partial(_gln_fused_kernel, eps=eps),
            out_shape=jax.ShapeDtypeStruct((n, c, m), x3.dtype),
            grid_spec=pltpu.PrefetchScalarGridSpec(
                num_scalar_prefetch=0,
                grid=(n // nb,),
                in_specs=[
                    pl.BlockSpec((nb, c, m), lambda i: (i, 0, 0)),
                    pl.BlockSpec((c, 1), lambda i: (0, 0)),
                    pl.BlockSpec((c, 1), lambda i: (0, 0)),
                ],
                out_specs=pl.BlockSpec((nb, c, m), lambda i: (i, 0, 0)),
            ),
            compiler_params=pltpu.CompilerParams(
                dimension_semantics=("parallel",),
                vmem_limit_bytes=_VMEM_LIMIT,
            ),
        )(x3, w2, b2)
        return out3.reshape(orig_shape)

    # ----- tiled two-pass path -----
    tile_m = _choose_tile_m(c, m)
    num_t = pl.cdiv(m, tile_m)
    needs_mask = (m % tile_m) != 0
    n_elems = float(c * m)

    scale, shift = pl.pallas_call(
        functools.partial(_gln_stats_kernel, eps=eps, n_elems=n_elems,
                          m_total=m, tile_m=tile_m, needs_mask=needs_mask),
        out_shape=(jax.ShapeDtypeStruct((n, c, 1), jnp.float32),
                   jax.ShapeDtypeStruct((n, c, 1), jnp.float32)),
        grid_spec=pltpu.PrefetchScalarGridSpec(
            num_scalar_prefetch=0,
            grid=(n, num_t),
            in_specs=[
                pl.BlockSpec((1, c, tile_m), lambda b, j: (b, 0, j)),
                pl.BlockSpec((c, 1), lambda b, j: (0, 0)),
                pl.BlockSpec((c, 1), lambda b, j: (0, 0)),
            ],
            out_specs=[
                pl.BlockSpec((1, c, 1), lambda b, j: (b, 0, 0)),
                pl.BlockSpec((1, c, 1), lambda b, j: (b, 0, 0)),
            ],
            scratch_shapes=[
                pltpu.VMEM((1, c, 1), jnp.float32),
                pltpu.VMEM((1, c, 1), jnp.float32),
            ],
        ),
        compiler_params=pltpu.CompilerParams(
            dimension_semantics=("parallel", "arbitrary"),
            vmem_limit_bytes=_VMEM_LIMIT,
        ),
    )(x3, w2, b2)

    out3 = pl.pallas_call(
        _gln_apply_kernel,
        out_shape=jax.ShapeDtypeStruct((n, c, m), x3.dtype),
        grid_spec=pltpu.PrefetchScalarGridSpec(
            num_scalar_prefetch=0,
            grid=(n, num_t),
            in_specs=[
                pl.BlockSpec((1, c, tile_m), lambda b, j: (b, 0, j)),
                pl.BlockSpec((1, c, 1), lambda b, j: (b, 0, 0)),
                pl.BlockSpec((1, c, 1), lambda b, j: (b, 0, 0)),
            ],
            out_specs=pl.BlockSpec((1, c, tile_m), lambda b, j: (b, 0, j)),
        ),
        compiler_params=pltpu.CompilerParams(
            dimension_semantics=("parallel", "parallel"),
            vmem_limit_bytes=_VMEM_LIMIT,
        ),
    )(x3, scale, shift)

    return out3.reshape(orig_shape)


# --------------------------------------------------------------------------
# Pure-JAX reference mirroring the PyTorch forward exactly.
# --------------------------------------------------------------------------
def _reference_gln(x, weight, bias, eps=1e-8):
    if x.ndim == 3:
        axes = (1, 2)
        w = jnp.asarray(weight, jnp.float32).reshape(x.shape[1], 1)
        b = jnp.asarray(bias, jnp.float32).reshape(x.shape[1], 1)
    else:
        axes = (1, 2, 3)
        w = jnp.asarray(weight, jnp.float32).reshape(x.shape[1], 1, 1)
        b = jnp.asarray(bias, jnp.float32).reshape(x.shape[1], 1, 1)
    mean = jnp.mean(x, axes, keepdims=True)
    var = jnp.mean((x - mean) ** 2, axes, keepdims=True)
    return w * (x - mean) / jnp.sqrt(var + eps) + b


if __name__ == "__main__":
    key = jax.random.PRNGKey(0)
    k1, k2, k3, k4, k5 = jax.random.split(key, 5)

    # ---- 4-D case: [N, C, K, S] (M = K*S = 128, lane-dense) ----
    N, C, K, S = 2, 4, 8, 16
    x4 = jax.random.normal(k1, (N, C, K, S), dtype=jnp.float32)
    w4 = 1.0 + 0.1 * jax.random.normal(k4, (C, 1, 1), dtype=jnp.float32)
    b4 = 0.1 * jax.random.normal(k5, (C, 1, 1), dtype=jnp.float32)
    out4 = jax.block_until_ready(global_layer_norm(x4, w4, b4, eps=1e-8))
    ref4 = _reference_gln(x4, w4, b4, eps=1e-8)
    assert jnp.allclose(out4, ref4, atol=1e-5, rtol=1e-5), "4D mismatch"

    # ---- 3-D case: [N, C, L] (no dummy K=1 axis inserted) ----
    L = 16
    x3 = jax.random.normal(k2, (N, C, L), dtype=jnp.float32)
    w3 = 1.0 + 0.1 * jax.random.normal(k4, (C, 1), dtype=jnp.float32)
    b3 = 0.1 * jax.random.normal(k5, (C, 1), dtype=jnp.float32)
    out3 = jax.block_until_ready(global_layer_norm(x3, w3, b3, eps=1e-8))
    ref3 = _reference_gln(x3, w3, b3, eps=1e-8)
    assert jnp.allclose(out3, ref3, atol=1e-5, rtol=1e-5), "3D mismatch"

    # ---- tiled two-pass path forced at small shapes ----
    # (a) exact-divisor lane tile: M = 256 -> tile 256 or 128, no masking.
    N2, C2, K2, S2 = 2, 8, 4, 64
    x4b = jax.random.normal(k3, (N2, C2, K2, S2), dtype=jnp.float32)
    w4b = 1.0 + 0.1 * jax.random.normal(k4, (C2, 1, 1), dtype=jnp.float32)
    b4b = 0.1 * jax.random.normal(k5, (C2, 1, 1), dtype=jnp.float32)
    out4b = jax.block_until_ready(
        global_layer_norm(x4b, w4b, b4b, eps=1e-8, force_tiled=True))
    ref4b = _reference_gln(x4b, w4b, b4b, eps=1e-8)
    assert jnp.allclose(out4b, ref4b, atol=1e-4, rtol=1e-4), "tiled mismatch"

    # (b) ragged last lane tile: M = 160 -> tiles of 128 + masked 32.
    N3, C3, K3, S3 = 2, 8, 4, 40
    x4c = jax.random.normal(k3, (N3, C3, K3, S3), dtype=jnp.float32)
    w4c = 1.0 + 0.1 * jax.random.normal(k4, (C3, 1, 1), dtype=jnp.float32)
    b4c = 0.1 * jax.random.normal(k5, (C3, 1, 1), dtype=jnp.float32)
    out4c = jax.block_until_ready(
        global_layer_norm(x4c, w4c, b4c, eps=1e-8, force_tiled=True))
    ref4c = _reference_gln(x4c, w4c, b4c, eps=1e-8)
    assert jnp.allclose(out4c, ref4c, atol=1e-4, rtol=1e-4), "ragged tiled mismatch"

    print("KERNEL_OK")
</pallas_src>

<mosaic_0001>
module attributes {stable_mosaic.version = 11 : i64} {
  func.func @_gln_fused_kernel(%arg0: i32, %arg1: memref<1x4x128xf32, #tpu.memory_space<vmem>>, %arg2: memref<4x1xf32, #tpu.memory_space<vmem>>, %arg3: memref<4x1xf32, #tpu.memory_space<vmem>>, %arg4: memref<1x4x128xf32, #tpu.memory_space<vmem>>) attributes {dimension_semantics = [#tpu.dimension_semantics<parallel>], iteration_bounds = array<i64: 2>, scalar_prefetch = 0 : i64, scratch_operands = 0 : i64, tpu.core_type = #tpu.core_type<tc>, window_params = [{transform_indices = @transform_0, window_bounds = array<i64: 1, 4, 128>}, {pipeline_mode = #tpu.pipeline_mode<synchronous>, transform_indices = @transform_1, window_bounds = array<i64: 4, 1>}, {pipeline_mode = #tpu.pipeline_mode<synchronous>, transform_indices = @transform_2, window_bounds = array<i64: 4, 1>}, {transform_indices = @transform_3, window_bounds = array<i64: 1, 4, 128>}]} {
    %c0 = arith.constant 0 : index
    %c0_0 = arith.constant 0 : index
    %c0_1 = arith.constant 0 : index
    %0 = vector.load %arg1[%c0, %c0_0, %c0_1] : memref<1x4x128xf32, #tpu.memory_space<vmem>>, vector<1x4x128xf32>
    %cst = arith.constant dense<0.000000e+00> : vector<1x4xf32>
    %1 = vector.multi_reduction <add>, %0, %cst [2] : vector<1x4x128xf32> to vector<1x4xf32>
    %2 = vector.shape_cast %1 : vector<1x4xf32> to vector<1x4x1xf32>
    %cst_2 = arith.constant 1.280000e+02 : f32
    %3 = vector.broadcast %cst_2 : f32 to vector<1x4x1xf32>
    %4 = arith.divf %2, %3 : vector<1x4x1xf32>
    %cst_3 = arith.constant dense<0.000000e+00> : vector<1x1xf32>
    %5 = vector.multi_reduction <add>, %4, %cst_3 [1] : vector<1x4x1xf32> to vector<1x1xf32>
    %6 = vector.shape_cast %5 : vector<1x1xf32> to vector<1x1x1xf32>
    %cst_4 = arith.constant 4.000000e+00 : f32
    %7 = vector.broadcast %cst_4 : f32 to vector<1x1x1xf32>
    %8 = arith.divf %6, %7 : vector<1x1x1xf32>
    %9 = vector.broadcast %8 : vector<1x1x1xf32> to vector<1x4x128xf32>
    %10 = arith.subf %0, %9 : vector<1x4x128xf32>
    %11 = arith.mulf %10, %10 : vector<1x4x128xf32>
    %cst_5 = arith.constant dense<0.000000e+00> : vector<1x4xf32>
    %12 = vector.multi_reduction <add>, %11, %cst_5 [2] : vector<1x4x128xf32> to vector<1x4xf32>
    %13 = vector.shape_cast %12 : vector<1x4xf32> to vector<1x4x1xf32>
    %cst_6 = arith.constant 1.280000e+02 : f32
    %14 = vector.broadcast %cst_6 : f32 to vector<1x4x1xf32>
    %15 = arith.divf %13, %14 : vector<1x4x1xf32>
    %cst_7 = arith.constant dense<0.000000e+00> : vector<1x1xf32>
    %16 = vector.multi_reduction <add>, %15, %cst_7 [1] : vector<1x4x1xf32> to vector<1x1xf32>
    %17 = vector.shape_cast %16 : vector<1x1xf32> to vector<1x1x1xf32>
    %cst_8 = arith.constant 4.000000e+00 : f32
    %18 = vector.broadcast %cst_8 : f32 to vector<1x1x1xf32>
    %19 = arith.divf %17, %18 : vector<1x1x1xf32>
    %cst_9 = arith.constant 9.99999993E-9 : f32
    %20 = vector.broadcast %cst_9 : f32 to vector<1x1x1xf32>
    %21 = arith.addf %19, %20 : vector<1x1x1xf32>
    %22 = math.rsqrt %21 : vector<1x1x1xf32>
    %c0_10 = arith.constant 0 : index
    %c0_11 = arith.constant 0 : index
    %23 = vector.load %arg2[%c0_10, %c0_11] : memref<4x1xf32, #tpu.memory_space<vmem>>, vector<4x1xf32>
    %24 = vector.shape_cast %23 : vector<4x1xf32> to vector<1x4x1xf32>
    %c0_12 = arith.constant 0 : index
    %c0_13 = arith.constant 0 : index
    %25 = vector.load %arg3[%c0_12, %c0_13] : memref<4x1xf32, #tpu.memory_space<vmem>>, vector<4x1xf32>
    %26 = vector.shape_cast %25 : vector<4x1xf32> to vector<1x4x1xf32>
    %27 = vector.broadcast %22 : vector<1x1x1xf32> to vector<1x4x1xf32>
    %28 = arith.mulf %24, %27 : vector<1x4x1xf32>
    %29 = vector.broadcast %8 : vector<1x1x1xf32> to vector<1x4x1xf32>
    %30 = arith.mulf %28, %29 : vector<1x4x1xf32>
    %31 = arith.subf %26, %30 : vector<1x4x1xf32>
    %32 = vector.broadcast %28 : vector<1x4x1xf32> to vector<1x4x128xf32>
    %33 = arith.mulf %0, %32 : vector<1x4x128xf32>
    %34 = vector.broadcast %31 : vector<1x4x1xf32> to vector<1x4x128xf32>
    %35 = arith.addf %33, %34 : vector<1x4x128xf32>
    %c0_14 = arith.constant 0 : index
    %c0_15 = arith.constant 0 : index
    %c0_16 = arith.constant 0 : index
    %36 = vector.load %arg4[%c0_14, %c0_15, %c0_16] : memref<1x4x128xf32, #tpu.memory_space<vmem>>, vector<1x4x128xf32>
    tpu.vector_store %arg4[%c0_14, %c0_15, %c0_16], %35 {strides = array<i32>} : memref<1x4x128xf32, #tpu.memory_space<vmem>>, vector<1x4x128xf32>,
    return
  }
  func.func @transform_0(%arg0: i32) -> (i32, i32, i32) {
    %c0_i32 = arith.constant 0 : i32
    %c0_i32_0 = arith.constant 0 : i32
    %c0_i32_1 = arith.constant 0 : i32
    return %arg0, %c0_i32, %c0_i32_0 : i32, i32, i32
  }
  func.func @transform_1(%arg0: i32) -> (i32, i32) {
    %c0_i32 = arith.constant 0 : i32
    %c0_i32_0 = arith.constant 0 : i32
    %c0_i32_1 = arith.constant 0 : i32
    return %c0_i32, %c0_i32_0 : i32, i32
  }
  func.func @transform_2(%arg0: i32) -> (i32, i32) {
    %c0_i32 = arith.constant 0 : i32
    %c0_i32_0 = arith.constant 0 : i32
    %c0_i32_1 = arith.constant 0 : i32
    return %c0_i32, %c0_i32_0 : i32, i32
  }
  func.func @transform_3(%arg0: i32) -> (i32, i32, i32) {
    %c0_i32 = arith.constant 0 : i32
    %c0_i32_0 = arith.constant 0 : i32
    %c0_i32_1 = arith.constant 0 : i32
    return %arg0, %c0_i32, %c0_i32_0 : i32, i32, i32
  }
}

</mosaic_0001>

<bundles_post_ra>
// kernel: tpu_custom_call.1
= control target key start
LH: loop header
LB: loop body
LE: loop exit
PB: predicated region body
PF: predicated region fallthrough
CT: control target
= control target key end

     0   :  { %8 = vsyncpa [#allocation3], 0  ;;  %s539_s0 = inlined_call_operand.vmem [shape: f32[2,4,128], index: 0, kind: input, shape index: {}]   ;;  %s540_s1 = inlined_call_operand.vmem [shape: f32[4,1], index: 1, kind: input, shape index: {}]   ;;  %s541_s2 = inlined_call_operand.vmem [shape: f32[4,1], index: 2, kind: input, shape index: {}]   ;;  %s542_s3 = inlined_call_operand.hbm [shape: f32[2,4,128], index: 3, kind: output, shape index: {}]  }
   0x1   :  { %10 = vsyncpa [#allocation3 + $0x1], 0  ;;  %s429_s12 = smov 0   ;;  %s431_s13 = smov 0  }
   0x2   :  { %s433_s14 = smov 0   ;;  %s435_s15 = smov 0  }
   0x3 LB: > { %s450_s16 = sadd.s32 4294967295, %s405_s15   ;;  %s289_s17 = sadd.s32 4294967294, %s405_s15   ;;  %s405_s15 = sphi %s435_s15, %s548_s15   ;;  %s401_s14 = sphi %s433_s14, %s547_s14   ;;  %s397_s13 = sphi %s431_s13, %s546_s13   ;;  %s393_s12 = sphi %s429_s12, %s545_s12  }
   0x4   : > { %s454_s18 = sadd.s32 1, %s405_s15   ;;  %s91_s19 = sadd.s32 1, %s401_s14 }
   0x5   : > { %s88_s20 = ssub.s32 %s405_s15, %s454_s18  ;;  %p101_p0 = scmp.ne.s32.totalorder %s401_s14, %s397_s13 }
   0x6   : > { %p89_p1 = scmp.eq.s32.totalorder %s88_s20, 0  ;;  %p102_p2 = scmp.eq.s32.totalorder %s450_s16, 1 }
   0x7   : > { %p107_p3 = scmp.ne.s32.totalorder %s397_s13, %s393_s12  ;;  %p108_p4 = scmp.eq.s32.totalorder %s289_s17, 1 }
   0x8   : > { %s465_s21 = scalar_select %p89_p1, %s401_s14, %s91_s19  }
   0x9   : > { %p467_p5 = por %p102_p2, %p101_p0  ;;  %p471_p6 = por %p108_p4, %p107_p3 }
   0xa   : > { %p292_p7 = scmp.ge.s32.totalorder %s405_s15, 1  ;;  %p139_p8 = scmp.lt.s32.totalorder %s405_s15, 3 }
   0xc   : > { %p140_p9 = pnand %p292_p7, %p139_p8 }
   0xd   : > { %p162_p10 = scmp.lt.s32.totalorder (!%p140_p9), %s450_s16, 1  ;;  %vm167_vm0 = vcmask (!%p140_p9), 1043456   ;;  %v407_v15 = vmov (!%p140_p9), 0   ;;  %v198_v27 = vld [vmem:[%s540_s1] sm:$0xf] (!%p140_p9)  ;;  %s159_s6 = sand.u32 (!%p140_p9), 1, %s397_s13  }
   0xe   : > { %143 = sbr.rel (%p140_p9) target bundleno = 513 (0x201), region = 32  ;;  %339 = vset.pattern.permute.xlu1 (!%p140_p9), %v407_v15  ;;  %340 = vset.pattern.permute.xlu0 (!%p140_p9), %v407_v15  ;;  %v199_v30 = vld [vmem:[%s541_s2] sm:$0xf] (!%p140_p9)  ;;  %s293_s7 = sshll.u32 (!%p140_p9), %s159_s6, 2 }
   0xf   : > { %s296_s8 = sshll.u32 (!%p140_p9), %s450_s16, 6  ;;  %s161_s9 = scalar_lea.vmem (!%p140_p9), [#allocation2], %s293_s7 }
  0x10   : > { %s230_s10 = sshll.u32 (!%p140_p9), %s161_s9, 4  ;;  %s497_s19 = scalar_lea.hbm (!%p140_p9), %s542_s3, %s296_s8  ;;  %s499_s10 = int_to_ptr.vmem [resolvable:$true] %s230_s10 }
  0x11   : > { %s217_s20 = scalar_lea.sflag (!%p140_p9), [#allocation3], %s159_s6 }
  0x15   : > { %s163_s24 = scalar_select %p162_p10, %s450_s16, 1 }
  0x16   : > { %s408_s16 = smov [#allocation2]  }
  0x17   : > { %s294_s25 = sshll.u32 %s163_s24, 2  ;;  %s343_s24 = scalar_lea.vmem %s499_s10, 64 }
  0x18   : > { %s165_s28 = scalar_lea.vmem %s539_s0, %s294_s25  ;;  %p344_p11 = scmp.ne.s32.totalorder %s499_s10, %s343_s24 }
  0x19   : > { %v166_v0 = vld [vmem:[%s165_s28] sm:$0xf]  ;;  %s347_s25 = sshll.u32 %s408_s16, 4  ;;  %s348_s25 = int_to_ptr.vmem [resolvable:$false] %s347_s25 }
  0x1a   : > { %v168_v1 = vsel %vm167_vm0, %v166_v0, 0.0  ;;  %p345_p12 = pnand %p344_p11, %p467_p5  ;;  %s349_s26 = scalar_lea.vmem %s348_s25, 128 }
  0x1b   : > { %169 = vadd.xlane.f32.xlu0 %v168_v1  ;;  %p350_p0 = scmp.lt.s32.totalorder %s499_s10, %s348_s25  ;;  %p351_p1 = scmp.lt.s32.totalorder %s349_s26, %s343_s24 }
  0x1c   : > { %p346_p13 = pneg %p345_p12 }
  0x1d   : > { %p352_p2 = por %p351_p1, %p350_p0 }
  0x1f   : > { %p353_p3 = pnand %p352_p2, %p346_p13 }
  0xa8   : > { %v170_v2 = vpop.xlane.xlu0 %169 }
  0xa9   : > { %v172_v3 = vmul.f32 0.0078125, %v170_v2 }
  0xab   : > { %v173_v4 = vsel %vm167_vm0, %v172_v3, 0.0 }
  0xac   : > { %v174_v5 = vrot.slane %v173_v4, 4 }
  0xae   : > { %v175_v6 = vadd.f32 %v174_v5, %v173_v4 }
  0xb0   : > { %v176_v7 = vrot.slane %v175_v6, 2 }
  0xb2   : > { %v177_v8 = vadd.f32 %v176_v7, %v175_v6 }
  0xb4   : > { %v178_v9 = vrot.slane %v177_v8, 1 }
  0xb6   : > { %v179_v10 = vadd.f32 %v178_v9, %v177_v8 }
  0xb8   : > { %v181_v11 = vmul.f32 0.25, %v179_v10 }
  0xba   : > { %v182_v12 = vsub.f32 %v166_v0, %v181_v11 }
  0xbc   : > { %v183_v13 = vmul.f32 %v182_v12, %v182_v12 }
  0xbe   : > { %v184_v14 = vsel %vm167_vm0, %v183_v13, 0.0 }
  0xbf   : > { %185 = vadd.xlane.f32.xlu0 %v184_v14 }
 0x14c   : > { %v186_v16 = vpop.xlane.xlu0 %185 }
 0x14d   : > { %v187_v17 = vmul.f32 0.0078125, %v186_v16 }
 0x14f   : > { %v188_v18 = vsel %vm167_vm0, %v187_v17, 0.0 }
 0x150   : > { %v189_v19 = vrot.slane %v188_v18, 4 }
 0x152   : > { %v190_v20 = vadd.f32 %v189_v19, %v188_v18 }
 0x154   : > { %v191_v21 = vrot.slane %v190_v20, 2 }
 0x156   : > { %v192_v22 = vadd.f32 %v191_v21, %v190_v20 }
 0x158   : > { %v193_v23 = vrot.slane %v192_v22, 1 }
 0x15a   : > { %v194_v24 = vadd.f32 %v193_v23, %v192_v22 }
 0x15c   : > { %v195_v25 = vmul.f32 0.25, %v194_v24 }
 0x15e   : > { %v196_v26 = vadd.f32 1e-08, %v195_v25 }
 0x160   : > { %341 = vrsqrt.f32 %v196_v26 }
 0x16a   : > { %v342_v28 = vpop.eup %341 }
 0x16b   : > { %v200_v29 = vmul.f32 %v342_v28, %v198_v27 }
 0x16d   : > { %205 = vperm.xlu1 %339, %v200_v29   ;;  %v201_v31 = vmul.f32 %v200_v29, %v181_v11 }
 0x16f   : > { %v202_v32 = vsub.f32 %v199_v30, %v201_v31 }
 0x171   : > { %211 = vperm.xlu1 %339, %v202_v32  }
 0x1ec   : > { %v206_v33 = vpop.permute.xlu1 %205 }
 0x1ed   : > { %v208_v34 = vmul.f32 %v206_v33, %v166_v0 }
 0x1f0   : > { %v212_v35 = vpop.permute.xlu1 %211 }
 0x1f1   : > { %v214_v36 = vadd.f32 %v212_v35, %v208_v34 }
 0x1f3   : > { %215 = vst [vmem:[%s161_s9] sm:$0xf] %v214_v36 }
 0x1f4   : > { %356 = shalt.err (!%p353_p3)
}
 0x1f5   : > { %s357_s27 = scalar_lea.hbm %s497_s19, 64  ;;  %s361_s30 = scalar_lea.hbm %s542_s3, 128 }
 0x1f6   : > { %p358_p4 = scmp.ne.s32.totalorder %s497_s19, %s357_s27  ;;  %p362_p9 = scmp.lt.u32.totalorder %s497_s19, %s542_s3 }
 0x1f7   : > { %p363_p10 = scmp.lt.u32.totalorder %s361_s30, %s357_s27  ;;  %p365_p12 = scmp.lt.u32.totalorder %s357_s27, %s497_s19 }
 0x1f8   : > { %p359_p7 = pnand %p358_p4, %p467_p5 }
 0x1f9   : > { %p364_p11 = por %p363_p10, %p362_p9 }
 0x1fa   : > { %p360_p8 = pneg %p359_p7 }
 0x1fb   : > { %p366_p13 = por %p365_p12, %p364_p11 }
 0x1fd   : > { %p367_p0 = pnand %p366_p13, %p360_p8 }
 0x1ff   : > { %370 = shalt.err (!%p367_p0)
}
 0x200   : > { %299 = dma.vmem_to_hbm [thread:$0]  (%p467_p5), %s499_s10, 64, %s497_s19, %s217_s20  }
 0x201 PF: > { %p305_p1 = scmp.ge.s32.totalorder %s405_s15, 2  ;;  %s242_s6 = sand.u32 1, %s393_s12  }
 0x202   : > { %s243_s7 = scalar_lea.sflag [#allocation3], %s242_s6 }
 0x203   : > { %p302_p2 = pnand %p305_p1, %p471_p6 }
 0x205   : > { %388 = dma.done.wait (!%p302_p2), %s243_s7, 64  }
 0x206   : > { %390 = vsyncadd (!%p302_p2), %s243_s7, 4294967232  ;;  %p13_p3 = scmp.ge.s32.totalorder %s454_s18, 4   ;;  %s545_s12 = smov %s397_s13 }
 0x207   : > { %s546_s13 = smov %s401_s14  ;;  %s547_s14 = smov %s465_s21 }
 0x208   : > { %s548_s15 = smov %s454_s18  ;;  %15 = sbr.rel (!%p13_p3) target bundleno = 3 (0x3), region = 67 }
 0x20f   :  { %248 = vsyncpa [#allocation3], 1 }
 0x210   :  { %250 = vsyncpa [#allocation3 + $0x1], 1 }

</bundles_post_ra>
